<compile_context>
chip_gen: v5e
topology: v5e:2x2
jax: 0.10.0
libtpu: 0.0.40
codegen_flags: <defaults>
</compile_context>

<pallas_src>
import functools

import jax
import jax.numpy as jnp
from jax.experimental import pallas as pl
from jax.experimental.pallas import tpu as pltpu

_LANE = 128
_MAX_BLOCK_BYTES = 512 * 1024  # per pipelined input block (x ~4 temps x 2 buffers << VMEM)


# --------------------------------------------------------------------------- kernels
def _argmax_lane_kernel(x_ref, val_ref, idx_ref):
    """Argmax over the LAST axis of a (TR, C) block; lane-dense (1, TR) outputs.

    The block is transposed once in-kernel (XLU, hidden under HBM-bound DMA) so the
    reduction runs down the sublane axis and both results come out lane-dense with no
    awkward (TR,1)->(1,TR) relayout of reduction results.
    """
    xt = x_ref[...].T                                       # (C, TR)
    C, TR = xt.shape
    m = jnp.max(xt, axis=0, keepdims=True)                  # (1, TR) per-row max
    row = jax.lax.broadcasted_iota(jnp.int32, (C, TR), 0)
    hit = (xt == m) | (xt != xt)                            # NaN-aware (NaN wins, like torch)
    cand = jnp.where(hit, row, jnp.int32(C))
    val_ref[...] = m
    idx_ref[...] = jnp.min(cand, axis=0, keepdims=True)     # first occurrence


def _argmax_sublane_kernel(x_ref, idx_ref):
    """Argmax over the SUBLANE axis of a (1, K, TT) block -> lane-dense (1, 1, TT)."""
    x = x_ref[0]                                            # (K, TT)
    K, TT = x.shape
    m = jnp.max(x, axis=0, keepdims=True)                   # (1, TT)
    row = jax.lax.broadcasted_iota(jnp.int32, (K, TT), 0)
    hit = (x == m) | (x != x)
    cand = jnp.where(hit, row, jnp.int32(K))
    idx_ref[...] = jnp.min(cand, axis=0, keepdims=True).reshape(1, 1, TT)


# ---------------------------------------------------------------- tile-size selection
def _pick_row_tile(R, C):
    if R <= 2 * _LANE:
        return R                                   # full-dim block is always legal
    cap = max(_LANE, _MAX_BLOCK_BYTES // (max(C, 1) * 4))
    tr = min(R, cap, 8 * _LANE)
    return max(_LANE, (tr // _LANE) * _LANE)       # multiple of 128: legal sublane & lane tile


def _pick_lane_tile(K, T):
    if T <= 4 * _LANE:
        return T
    cap = max(_LANE, _MAX_BLOCK_BYTES // (max(K, 1) * 4))
    tt = min(T, cap, 16 * _LANE)
    return max(_LANE, (tt // _LANE) * _LANE)


# ------------------------------------------------------------------- pallas wrappers
def _argmax_lane(x2d):
    """Per-row (max, argmax) over the last axis of a 2-D (R, C) array."""
    R, C = x2d.shape
    tr = _pick_row_tile(R, C)
    # TODO(synk): tile the C (reduction) axis with a VMEM accumulator for very large C.
    vals, idxs = pl.pallas_call(
        _argmax_lane_kernel,
        out_shape=(jax.ShapeDtypeStruct((1, R), x2d.dtype),
                   jax.ShapeDtypeStruct((1, R), jnp.int32)),
        grid=(pl.cdiv(R, tr),),
        in_specs=[pl.BlockSpec((tr, C), lambda i: (i, 0))],
        out_specs=(pl.BlockSpec((1, tr), lambda i: (0, i)),
                   pl.BlockSpec((1, tr), lambda i: (0, i))),
        compiler_params=pltpu.CompilerParams(dimension_semantics=("parallel",)),
    )(x2d)
    return vals[0], idxs[0]                                  # (R,), (R,)


def _argmax_sublane(x3d):
    """Argmax over axis 1 of a (G, K, T) array -> (G, 1, T) int32 (lane-dense blocks)."""
    G, K, T = x3d.shape
    tt = _pick_lane_tile(K, T)
    # TODO(synk): tile the K (reduction) axis with a VMEM accumulator for very large K.
    return pl.pallas_call(
        _argmax_sublane_kernel,
        out_shape=jax.ShapeDtypeStruct((G, 1, T), jnp.int32),
        grid=(G, pl.cdiv(T, tt)),
        in_specs=[pl.BlockSpec((1, K, tt), lambda g, t: (g, 0, t))],
        out_specs=pl.BlockSpec((1, 1, tt), lambda g, t: (g, 0, t)),
        compiler_params=pltpu.CompilerParams(
            dimension_semantics=("parallel", "parallel")),
    )(x3d)


# ----------------------------------------------------------------------- module logic
def _prod(xs):
    p = 1
    for s in xs:
        p *= s
    return p


def _argmax_along_dim(x, dim, keep_dims):
    ndim = x.ndim
    d = dim % ndim
    shape = x.shape
    if d == ndim - 1:
        # reduction axis is already the lane axis; (R, C) view is a free reshape.
        R, C = _prod(shape[:-1]), shape[-1]
        _, idx = _argmax_lane(x.reshape(R, C))
        out = idx.reshape(shape[:-1] + (1,))
    else:
        # no jnp.moveaxis HBM transpose: view as (G, K, T) and reduce down sublanes.
        G, K, T = _prod(shape[:d]), shape[d], _prod(shape[d + 1:])
        out = _argmax_sublane(x.reshape(G, K, T))
        out = out.reshape(shape[:d] + (1,) + shape[d + 1:])
    if not keep_dims:
        out = jnp.squeeze(out, axis=d)
    return out


def _argmax_global(x):
    """torch.argmax(x): two-stage -- tiled per-row (max, argmax), tiny O(R) combine."""
    flat = x.reshape(-1)
    N = flat.shape[0]
    if N < _LANE:
        C = N
    elif N < 4 * _LANE:
        C = _LANE
    else:
        C = 4 * _LANE                               # lane-dense, multiple of 128
    R = -(-N // C)
    pad = R * C - N
    if pad:
        if jnp.issubdtype(flat.dtype, jnp.floating):
            fill = -jnp.inf
        elif flat.dtype == jnp.bool_:
            fill = False
        else:
            fill = jnp.iinfo(flat.dtype).min
        flat = jnp.pad(flat, (0, pad), constant_values=fill)
    vals, idxs = _argmax_lane(flat.reshape(R, C))   # stage 1: Pallas (all heavy bytes)
    row = jnp.argmax(vals)                          # stage 2: tiny combine (NaN-aware)
    # NOTE: int32 index; torch returns int64 (identical for < 2^31 elements).
    return (row.astype(jnp.int32) * jnp.int32(C) + idxs[row]).astype(jnp.int32)


@functools.partial(jax.jit, static_argnames=("dim", "keep_dims"))
def argmax_module(x, dim=None, keep_dims=True):
    """Mirrors ArgMaxModule.forward (including its `if self.dim:` truthiness check,
    so dim=0 and dim=None both take the global-argmax path)."""
    if dim:
        return _argmax_along_dim(x, dim, keep_dims)
    return _argmax_global(x)


# ------------------------------------------------------------------------------ test
if __name__ == "__main__":
    key = jax.random.PRNGKey(0)
    x = jax.random.normal(key, (2, 4, 16, 16), dtype=jnp.float32)

    # ArgMaxModule(dim=3, keepDims=True)  -> lane-reduce kernel
    out = argmax_module(x, dim=3, keep_dims=True)
    jax.block_until_ready(out)
    ref = jnp.argmax(x, axis=3, keepdims=True).astype(jnp.int32)
    assert out.shape == (2, 4, 16, 1), out.shape
    assert bool(jnp.all(out == ref)), "dim=3 argmax mismatch"

    # ArgMaxModule(dim=1, keepDims=True)  -> sublane-reduce kernel, no transpose
    out = argmax_module(x, dim=1, keep_dims=True)
    jax.block_until_ready(out)
    ref = jnp.argmax(x, axis=1, keepdims=True).astype(jnp.int32)
    assert out.shape == (2, 1, 16, 16), out.shape
    assert bool(jnp.all(out == ref)), "dim=1 argmax mismatch"

    # ArgMaxModule(dim=2, keepDims=False)
    out = argmax_module(x, dim=2, keep_dims=False)
    jax.block_until_ready(out)
    ref = jnp.argmax(x, axis=2).astype(jnp.int32)
    assert out.shape == (2, 4, 16), out.shape
    assert bool(jnp.all(out == ref)), "dim=2 argmax mismatch"

    # ArgMaxModule()  -> global flattened argmax (two-stage)
    out = argmax_module(x)
    jax.block_until_ready(out)
    ref = jnp.argmax(x).astype(jnp.int32)
    assert out.shape == (), out.shape
    assert int(out) == int(ref), "global argmax mismatch"

    print("KERNEL_OK")
</pallas_src>

<mosaic_0001>
module attributes {stable_mosaic.version = 11 : i64} {
  func.func @_argmax_lane_kernel(%arg0: i32, %arg1: memref<128x16xf32, #tpu.memory_space<vmem>>, %arg2: memref<1x128xf32, #tpu.memory_space<vmem>>, %arg3: memref<1x128xi32, #tpu.memory_space<vmem>>) attributes {dimension_semantics = [#tpu.dimension_semantics<parallel>], iteration_bounds = array<i64: 1>, scalar_prefetch = 0 : i64, scratch_operands = 0 : i64, tpu.core_type = #tpu.core_type<tc>, window_params = [{transform_indices = @transform_0, window_bounds = array<i64: 128, 16>}, {transform_indices = @transform_1, window_bounds = array<i64: 1, 128>}, {transform_indices = @transform_2, window_bounds = array<i64: 1, 128>}]} {
    %c0 = arith.constant 0 : index
    %c0_0 = arith.constant 0 : index
    %0 = vector.load %arg1[%c0, %c0_0] : memref<128x16xf32, #tpu.memory_space<vmem>>, vector<128x16xf32>
    %1 = tpu.transpose %0, [1, 0] : vector<128x16xf32> -> vector<16x128xf32>
    %cst = arith.constant dense<0xFF800000> : vector<128xf32>
    %2 = vector.multi_reduction <maximumf>, %1, %cst [0] : vector<16x128xf32> to vector<128xf32>
    %3 = vector.shape_cast %2 : vector<128xf32> to vector<1x128xf32>
    %4 = tpu.iota {dimensions = array<i32: 0>} : vector<16x128xi32>
    %5 = vector.broadcast %3 : vector<1x128xf32> to vector<16x128xf32>
    %6 = arith.cmpf oeq, %1, %5 : vector<16x128xf32>
    %7 = arith.cmpf one, %1, %1 : vector<16x128xf32>
    %8 = arith.ori %6, %7 : vector<16x128xi1>
    %c16_i32 = arith.constant 16 : i32
    %9 = vector.broadcast %c16_i32 : i32 to vector<16x128xi32>
    %10 = arith.select %8, %4, %9 : vector<16x128xi1>, vector<16x128xi32>
    %c0_1 = arith.constant 0 : index
    %c0_2 = arith.constant 0 : index
    %11 = vector.load %arg2[%c0_1, %c0_2] : memref<1x128xf32, #tpu.memory_space<vmem>>, vector<1x128xf32>
    tpu.vector_store %arg2[%c0_1, %c0_2], %3 {strides = array<i32>} : memref<1x128xf32, #tpu.memory_space<vmem>>, vector<1x128xf32>,
    %cst_3 = arith.constant dense<2147483647> : vector<128xi32>
    %12 = vector.multi_reduction <minsi>, %10, %cst_3 [0] : vector<16x128xi32> to vector<128xi32>
    %13 = vector.shape_cast %12 : vector<128xi32> to vector<1x128xi32>
    %c0_4 = arith.constant 0 : index
    %c0_5 = arith.constant 0 : index
    %14 = vector.load %arg3[%c0_4, %c0_5] : memref<1x128xi32, #tpu.memory_space<vmem>>, vector<1x128xi32>
    tpu.vector_store %arg3[%c0_4, %c0_5], %13 {strides = array<i32>} : memref<1x128xi32, #tpu.memory_space<vmem>>, vector<1x128xi32>,
    return
  }
  func.func @transform_0(%arg0: i32) -> (i32, i32) {
    %c0_i32 = arith.constant 0 : i32
    %c0_i32_0 = arith.constant 0 : i32
    return %arg0, %c0_i32 : i32, i32
  }
  func.func @transform_1(%arg0: i32) -> (i32, i32) {
    %c0_i32 = arith.constant 0 : i32
    %c0_i32_0 = arith.constant 0 : i32
    return %c0_i32, %arg0 : i32, i32
  }
  func.func @transform_2(%arg0: i32) -> (i32, i32) {
    %c0_i32 = arith.constant 0 : i32
    %c0_i32_0 = arith.constant 0 : i32
    return %c0_i32, %arg0 : i32, i32
  }
}

</mosaic_0001>

<bundles_post_ra>
// kernel: squeeze.1
= control target key start
LH: loop header
LB: loop body
LE: loop exit
PB: predicated region body
PF: predicated region fallthrough
CT: control target
= control target key end

     0   :  { %s142_s0 = inlined_call_operand.vmem [shape: s32[128], index: 0, kind: input, shape index: {}]   ;;  %s143_s1 = inlined_call_operand.hbm [shape: s32[2,4,16,1], index: 1, kind: output, shape index: {}]  }
   0x1   :  { %v5_v0 = vld [vmem:[%s142_s0] sm:$0x1] }
   0x2   :  { %6 = vst [vmem:[#allocation3] sm:$0x1] %v5_v0 }
   0x3   :  { %2 = vsyncpa [#allocation1], 0  ;;  %s110_s0 = smov 112   ;;  %s111_s8 = smov 80   ;;  %vm8_vm0 = vcmask 130048  }
   0x4   :  { %s112_s9 = smov 48   ;;  %s113_s10 = smov 96  }
   0x5   :  { %s114_s11 = smov 64   ;;  %s115_s12 = smov 32  }
   0x6   :  { %s116_s13 = smov 16   ;;  %s117_s14 = smov [#allocation0]  }
   0x7   :  { %s67_s15 = sshll.u32 %s117_s14, 4  ;;  %s69_s1 = sshll.u32 %s143_s1, 4  ;;  %s68_s15 = int_to_ptr.vmem [resolvable:$true] %s67_s15  ;;  %s70_s1 = int_to_ptr.hbm [resolvable:$true] %s69_s1 }
   0x9   :  { %v10_v1 = vld [vmem:[#allocation3] sm:$0x1]  }
   0xa   :  { %v22_v2 = vld [vmem:[#allocation3] sm:$0x1]   ;;  %11 = vrot.lane.b32.xlu0 %v10_v1, %s110_s0 }
   0xb   :  { %23 = vrot.lane.b32.xlu1 %v22_v2, %s111_s8  ;;  %v34_v3 = vld [vmem:[#allocation3] sm:$0x1]  }
   0xc   :  { %35 = vrot.lane.b32.xlu2 %v34_v3, %s112_s9  ;;  %v16_v4 = vld [vmem:[#allocation3] sm:$0x1]  }
   0xd   :  { %v28_v5 = vld [vmem:[#allocation3] sm:$0x1]  }
   0xe   :  { %v40_v6 = vld [vmem:[#allocation3] sm:$0x1]  }
   0xf   :  { %v46_v7 = vld [vmem:[#allocation3] sm:$0x1]  }
  0x10   :  { %v7_v8 = vld [vmem:[#allocation3] sm:$0x1]  }
  0x11   :  { %9 = vst.msk [vmem:[#allocation2] sm:$0x1] %vm8_vm0, %v7_v8  }
  0x12   :  { %17 = vrot.lane.b32.xlu0 %v16_v4, %s113_s10 }
  0x13   :  { %29 = vrot.lane.b32.xlu1 %v28_v5, %s114_s11 }
  0x14   :  { %41 = vrot.lane.b32.xlu2 %v40_v6, %s115_s12 }
  0x1a   :  { %47 = vrot.lane.b32.xlu0 %v46_v7, %s116_s13 }
  0x66   :  { %v36_v9 = vpop.permute.xlu2 %35  }
  0x67   :  { %39 = vst.msk [vmem:[#allocation2 + $0x9] sm:$0x1] %vm8_vm0, %v36_v9  }
  0x6e   :  { %v42_v10 = vpop.permute.xlu2 %41  }
  0x6f   :  { %45 = vst.msk [vmem:[#allocation2 + $0xa] sm:$0x1] %vm8_vm0, %v42_v10  }
  0x7c   :  { %v12_v11 = vpop.permute.xlu0 %11  }
  0x7d   :  { %v24_v12 = vpop.permute.xlu1 %23   ;;  %15 = vst.msk [vmem:[#allocation2 + $0x1] sm:$0x1] %vm8_vm0, %v12_v11  }
  0x7e   :  { %27 = vst.msk [vmem:[#allocation2 + $0x3] sm:$0x1] %vm8_vm0, %v24_v12  }
  0x84   :  { %v18_v13 = vpop.permute.xlu0 %17  }
  0x85   :  { %v30_v14 = vpop.permute.xlu1 %29   ;;  %21 = vst.msk [vmem:[#allocation2 + $0x2] sm:$0x1] %vm8_vm0, %v18_v13  }
  0x86   :  { %33 = vst.msk [vmem:[#allocation2 + $0x8] sm:$0x1] %vm8_vm0, %v30_v14  }
  0x8c   :  { %v48_v15 = vpop.permute.xlu0 %47   ;;  %v54_v16 = vld [vmem:[#allocation2] sm:$0xf] }
  0x8d   :  { %51 = vst.msk [vmem:[#allocation2 + $0xb] sm:$0x1] %vm8_vm0, %v48_v15  }
  0x8e   :  { %57 = vst [vmem:[#allocation0] sm:$0xf] %v54_v16 }
  0x94   :  { %v59_v17 = vld [vmem:[#allocation2 + $0x8] sm:$0xf] }
  0x95   :  { %63 = vst [vmem:[#allocation0 + $0x4] sm:$0xf] %v59_v17 }
  0x96   :  { %72 = dma.vmem_to_hbm [thread:$0]  %s68_s15, 128, %s70_s1, [#allocation1]  }
  0x97   :  { %108 = dma.done.wait [#allocation1], 128  }
  0x98   :  { %109 = vsyncadd [#allocation1], 4294967168 }
  0x99   :  { %75 = vsyncpa [#allocation1], 1 }

// kernel: argmax_module.1
= control target key start
LH: loop header
LB: loop body
LE: loop exit
PB: predicated region body
PF: predicated region fallthrough
CT: control target
= control target key end

     0   :  { %8 = vsyncpa [#allocation3], 0  ;;  %s211_s0 = inlined_call_operand.hbm [shape: f32[128,16], index: 0, kind: input, shape index: {}]   ;;  %s212_s1 = inlined_call_operand.hbm [shape: f32[1,128], index: 1, kind: output, shape index: {0}]   ;;  %s213_s2 = inlined_call_operand.vmem [shape: s32[1,128], index: 2, kind: output, shape index: {1}]  }
   0x1   :  { %9 = vsyncpa [#allocation4], 0  ;;  %s14_s11 = sshll.u32 %s211_s0, 4  ;;  %s183_s12 = smov [#allocation2]   ;;  %s15_s11 = int_to_ptr.hbm [resolvable:$true] %s14_s11 }
   0x2   :  { %s16_s13 = sshll.u32 %s183_s12, 4  ;;  %s184_s14 = smov 128   ;;  %s17_s13 = int_to_ptr.vmem [resolvable:$true] %s16_s13 }
   0x3   :  { %s185_s15 = smov 8  }
   0x4   :  { %22 = dma.hbm_to_vmem [thread:$0]  %s15_s11, 2048, %s17_s13, [#allocation3], %s184_s14, %s184_s14, %s185_s15  }
   0x5   :  { %179 = dma.done.wait [#allocation3], 2048  }
   0x6   :  { %180 = vsyncadd [#allocation3], 4294965248  ;;  %v27_v0 = vld [vmem:[#allocation2] sm:$0xff]  ;;  %v28_v1 = vld [vmem:[#allocation2 + $0x8] sm:$0xff]  ;;  %v82_v21 = vlaneseq  ;;  %s186_s0 = smov [#allocation5]   ;;  %s113_s19 = sshll.u32 %s212_s1, 4  ;;  %s114_s19 = int_to_ptr.hbm [resolvable:$true] %s113_s19 }
   0x7   :  { %43 = vxpose.xlu0.b32.start [1/16] (narrow) %v27_v0, 16  ;;  %v29_v2 = vld [vmem:[#allocation2 + $0x10] sm:$0xff]  ;;  %v30_v3 = vld [vmem:[#allocation2 + $0x18] sm:$0xff]  ;;  %v31_v4 = vld [vmem:[#allocation2 + $0x20] sm:$0xff]  ;;  %s111_s16 = sshll.u32 %s186_s0, 4  ;;  %s112_s16 = int_to_ptr.vmem [resolvable:$true] %s111_s16 }
   0x8   :  { %v32_v5 = vld [vmem:[#allocation2 + $0x28] sm:$0xff]  ;;  %v33_v6 = vld [vmem:[#allocation2 + $0x30] sm:$0xff]  ;;  %v34_v7 = vld [vmem:[#allocation2 + $0x38] sm:$0xff]  ;;  %v83_v24 = vshrl.u32 %v82_v21, 7 }
   0x9   :  { %v35_v8 = vld [vmem:[#allocation2 + $0x40] sm:$0xff]  ;;  %v36_v9 = vld [vmem:[#allocation2 + $0x48] sm:$0xff]  ;;  %v37_v10 = vld [vmem:[#allocation2 + $0x50] sm:$0xff] }
   0xa   :  { %v38_v11 = vld [vmem:[#allocation2 + $0x58] sm:$0xff]  ;;  %v39_v12 = vld [vmem:[#allocation2 + $0x60] sm:$0xff]  ;;  %v40_v13 = vld [vmem:[#allocation2 + $0x68] sm:$0xff]  ;;  %v84_v27 = vadd.s32 8, %v83_v24 }
   0xb   :  { %v41_v14 = vld [vmem:[#allocation2 + $0x70] sm:$0xff]  ;;  %v42_v15 = vld [vmem:[#allocation2 + $0x78] sm:$0xff] }
   0xf   :  { %44 = vxpose.xlu0.b32.cont [2/16] (narrow) %v28_v1, 16 }
  0x17   :  { %45 = vxpose.xlu0.b32.cont [3/16] (narrow) %v29_v2, 16 }
  0x1f   :  { %46 = vxpose.xlu0.b32.cont [4/16] (narrow) %v30_v3, 16 }
  0x27   :  { %47 = vxpose.xlu0.b32.cont [5/16] (narrow) %v31_v4, 16 }
  0x2f   :  { %48 = vxpose.xlu0.b32.cont [6/16] (narrow) %v32_v5, 16 }
  0x37   :  { %49 = vxpose.xlu0.b32.cont [7/16] (narrow) %v33_v6, 16 }
  0x3f   :  { %50 = vxpose.xlu0.b32.cont [8/16] (narrow) %v34_v7, 16 }
  0x47   :  { %51 = vxpose.xlu0.b32.cont [9/16] (narrow) %v35_v8, 16 }
  0x4f   :  { %52 = vxpose.xlu0.b32.cont [10/16] (narrow) %v36_v9, 16 }
  0x57   :  { %53 = vxpose.xlu0.b32.cont [11/16] (narrow) %v37_v10, 16 }
  0x5f   :  { %54 = vxpose.xlu0.b32.cont [12/16] (narrow) %v38_v11, 16 }
  0x67   :  { %55 = vxpose.xlu0.b32.cont [13/16] (narrow) %v39_v12, 16 }
  0x6f   :  { %56 = vxpose.xlu0.b32.cont [14/16] (narrow) %v40_v13, 16 }
  0x77   :  { %57 = vxpose.xlu0.b32.cont [15/16] (narrow) %v41_v14, 16 }
  0x7f   :  { %58 = vxpose.xlu0.b32.end [16/16] (narrow) %v42_v15, 16 }
  0xab   :  { %v59_v16 = vpop.trf.xlu0 }
  0xac   :  { %vm87_vm0 = vcmp.ne.f32.partialorder %v59_v16, %v59_v16 }
  0xb3   :  { %v60_v17 = vpop.trf.xlu0 }
  0xb4   :  { %v75_v18 = vmax.f32 %v59_v16, %v60_v17  ;;  %vm88_vm3 = vcmp.ne.f32.partialorder %v60_v17, %v60_v17 }
  0xb6   :  { %v76_v19 = vrot.slane %v75_v18, 4 }
  0xb8   :  { %v77_v20 = vmax.f32 %v75_v18, %v76_v19 }
  0xba   :  { %v78_v22 = vrot.slane %v77_v20, 2 }
  0xbc   :  { %v79_v23 = vmax.f32 %v77_v20, %v78_v22 }
  0xbe   :  { %v80_v25 = vrot.slane %v79_v23, 1 }
  0xc0   :  { %v81_v26 = vmax.f32 %v79_v23, %v80_v25 }
  0xc2   :  { %vm85_vm1 = vcmp.eq.f32.partialorder %v59_v16, %v81_v26  ;;  %vm86_vm2 = vcmp.eq.f32.partialorder %v60_v17, %v81_v26  ;;  %93 = vst [vmem:[#allocation5] sm:$0x1] %v81_v26 }
  0xc3   :  { %vm89_vm4 = vmor %vm85_vm1, %vm87_vm0  ;;  %116 = dma.vmem_to_hbm [thread:$0]  %s112_s16, 16, %s114_s19, [#allocation4]  }
  0xc4   :  { %vm90_vm5 = vmor %vm86_vm2, %vm88_vm3  ;;  %v91_v28 = vsel %vm89_vm4, %v83_v24, 16 }
  0xc5   :  { %v92_v29 = vsel %vm90_vm5, %v84_v27, 16 }
  0xc6   :  { %vm94_vm6 = vcmp.lt.s32.totalorder %v91_v28, %v92_v29 }
  0xc7   :  { %v95_v30 = vsel %vm94_vm6, %v91_v28, %v92_v29 }
  0xc8   :  { %v96_v31 = vrot.slane %v95_v30, 4 }
  0xca   :  { %vm97_vm7 = vcmp.lt.s32.totalorder %v95_v30, %v96_v31 }
  0xcb   :  { %v98_v32 = vsel %vm97_vm7, %v95_v30, %v96_v31 }
  0xcc   :  { %v99_v33 = vrot.slane %v98_v32, 2 }
  0xce   :  { %vm100_vm8 = vcmp.lt.s32.totalorder %v98_v32, %v99_v33 }
  0xcf   :  { %v101_v34 = vsel %vm100_vm8, %v98_v32, %v99_v33 }
  0xd0   :  { %v102_v35 = vrot.slane %v101_v34, 1 }
  0xd2   :  { %vm103_vm9 = vcmp.lt.s32.totalorder %v101_v34, %v102_v35 }
  0xd3   :  { %v104_v36 = vsel %vm103_vm9, %v101_v34, %v102_v35 }
  0xd4   :  { %105 = vst [vmem:[%s213_s2] sm:$0x1] %v104_v36 }
  0xd5   :  { %181 = dma.done.wait [#allocation4], 16  }
  0xd6   :  { %182 = vsyncadd [#allocation4], 4294967280 }
  0xd7   :  { %125 = vsyncpa [#allocation3], 1 }
  0xd8   :  { %126 = vsyncpa [#allocation4], 1 }

</bundles_post_ra>
